<compile_context>
chip_gen: v7x
topology: tpu7x:2x2x1
jax: 0.10.0
libtpu: 0.0.40
codegen_flags: <defaults>
</compile_context>

<pallas_src>
import jax
import jax.numpy as jnp
from jax import lax
from jax.experimental import pallas as pl
from jax.experimental.pallas import tpu as pltpu


def _head_kernel(x_ref, wqkv_ref, o_ref):
    # x_ref block: (Bt, T, C); wqkv_ref: (C, 3H); o_ref block: (Bt, T, H)
    bt, t, c = x_ref.shape
    h = o_ref.shape[-1]
    in_dt = x_ref.dtype           # bf16 -> MXU-native matmuls; f32 -> casts are no-ops
    scale = float(h) ** -0.5      # trace-time Python constant (no runtime op)

    x = x_ref[...]                # (Bt, T, C)
    w = wqkv_ref[...]             # (C, 3H), order: k | q | v

    # --- single fused QKV projection (fold batch rows into the matmul M dim) ---
    x2 = x.reshape(bt * t, c)
    kqv = jnp.dot(x2, w, preferred_element_type=jnp.float32)      # (Bt*T, 3H) f32 acc
    kqv = kqv.reshape(bt, t, 3 * h)

    k = kqv[:, :, 0 * h:1 * h]                                    # (Bt, T, H) f32
    q = kqv[:, :, 1 * h:2 * h] * scale                            # scale q, not scores
    v = kqv[:, :, 2 * h:3 * h]                                    # (Bt, T, H) f32

    # --- attention scores: batched contraction over head dim, no explicit k.T ---
    wei = jnp.einsum('bqd,bkd->bqk', q.astype(in_dt), k.astype(in_dt),
                     preferred_element_type=jnp.float32)          # (Bt, T, T) f32

    # causal (lower-triangular) mask == masked_fill(tril == 0, -inf)
    row = lax.broadcasted_iota(jnp.int32, (bt, t, t), 1)
    col = lax.broadcasted_iota(jnp.int32, (bt, t, t), 2)
    wei = jnp.where(col <= row, wei, -jnp.inf)

    # --- numerically stable softmax, f32 throughout ---
    m = jnp.max(wei, axis=-1, keepdims=True)
    e = jnp.exp(wei - m)
    s = jnp.sum(e, axis=-1, keepdims=True)
    r = pl.reciprocal(s, approx=True)        # EUP slot (otherwise idle)
    r = r * (2.0 - s * r)                    # one Newton step -> ~f32-exact
    p = e * r

    # dropout: identity (eval mode, p = 0)

    out = jnp.einsum('bqk,bkd->bqd', p.astype(in_dt), v.astype(in_dt),
                     preferred_element_type=jnp.float32)          # (Bt, T, H) f32 acc
    o_ref[...] = out.astype(o_ref.dtype)


def _choose_block_b(B, T, C, H, itemsize):
    """Batch rows per grid step: big enough to amortize ~0.35us/step overhead, small
    enough to fit VMEM (double-buffered), and keep >=2 grid steps when B allows so the
    'parallel' axis can be split across v7x's two TensorCores."""
    per_row = 4 * (T * C + 4 * T * H + T * T) + itemsize * (T * C + T * H)
    budget = 8 * 1024 * 1024  # ~8 MiB f32 working set per grid step
    divisors = [d for d in range(1, B + 1) if B % d == 0]
    fitting = [d for d in divisors if d * per_row <= budget] or [1]
    multi = [d for d in fitting if B // d >= 2]
    return max(multi) if multi else max(fitting)


def head_forward(x, wk, wq, wv, *, block_b=None):
    """x: (B, T, C); wk/wq/wv: (C, H) (pre-transposed nn.Linear weights) -> (B, T, H)."""
    B, T, C = x.shape
    H = wk.shape[1]

    # Fuse the three projection weights into one (C, 3H) operand (order: k | q | v).
    wqkv = jnp.concatenate([wk, wq, wv], axis=1).astype(x.dtype)

    if block_b is None:
        block_b = _choose_block_b(B, T, C, H, jnp.dtype(x.dtype).itemsize)
    grid = (B // block_b,)

    return pl.pallas_call(
        _head_kernel,
        out_shape=jax.ShapeDtypeStruct((B, T, H), x.dtype),
        grid_spec=pltpu.PrefetchScalarGridSpec(
            num_scalar_prefetch=0,
            grid=grid,
            in_specs=[
                pl.BlockSpec((block_b, T, C), lambda b: (b, 0, 0)),
                # constant index_map -> weight block stays resident, no re-DMA per step
                pl.BlockSpec((C, 3 * H), lambda b: (0, 0)),
            ],
            out_specs=pl.BlockSpec((block_b, T, H), lambda b: (b, 0, 0)),
        ),
        compiler_params=pltpu.CompilerParams(
            dimension_semantics=("parallel",),
            vmem_limit_bytes=32 * 1024 * 1024,
        ),
    )(x, wqkv)


def reference_forward(x, wk, wq, wv):
    """Pure-JAX reference replicating the PyTorch forward (eval mode)."""
    k = x @ wk
    q = x @ wq
    v = x @ wv
    wei = (q @ jnp.swapaxes(k, -2, -1)) * (k.shape[-1] ** -0.5)
    T = x.shape[1]
    tril = jnp.tril(jnp.ones((T, T), dtype=bool))
    wei = jnp.where(tril, wei, -jnp.inf)
    wei = jax.nn.softmax(wei, axis=-1)
    return wei @ v


if __name__ == "__main__":
    # config: n_embd=32, block_size=8 (== T), head_size=16, dropout=0.0
    B, T, C, HS = 2, 8, 32, 16

    key = jax.random.PRNGKey(0)
    kx, kk, kq, kv = jax.random.split(key, 4)

    x = jax.random.normal(kx, (B, T, C), dtype=jnp.float32)
    # nn.Linear(C, HS, bias=False) stores weight (HS, C); pre-transpose to (C, HS).
    wk = (jax.random.normal(kk, (HS, C), dtype=jnp.float32) * (C ** -0.5)).T
    wq = (jax.random.normal(kq, (HS, C), dtype=jnp.float32) * (C ** -0.5)).T
    wv = (jax.random.normal(kv, (HS, C), dtype=jnp.float32) * (C ** -0.5)).T

    # --- f32 path: tight tolerance vs pure-JAX reference ---
    out = head_forward(x, wk, wq, wv)
    jax.block_until_ready(out)
    ref = reference_forward(x, wk, wq, wv)
    assert out.shape == (B, T, HS)
    assert jnp.allclose(out, ref, atol=1e-5, rtol=1e-5), "f32 mismatch vs reference"

    # --- bf16 path: halved HBM traffic + bf16 MXU, f32 softmax/accumulation inside ---
    x16 = x.astype(jnp.bfloat16)
    wk16, wq16, wv16 = (w.astype(jnp.bfloat16) for w in (wk, wq, wv))
    out16 = head_forward(x16, wk16, wq16, wv16)
    jax.block_until_ready(out16)
    ref16 = reference_forward(x16.astype(jnp.float32), wk16.astype(jnp.float32),
                              wq16.astype(jnp.float32), wv16.astype(jnp.float32))
    assert out16.shape == (B, T, HS)
    assert jnp.allclose(out16.astype(jnp.float32), ref16, atol=1e-1, rtol=1e-1), \
        "bf16 mismatch vs reference"

    print("KERNEL_OK")
</pallas_src>

<mosaic_0001>
module attributes {stable_mosaic.version = 11 : i64} {
  func.func @_head_kernel(%arg0: i32, %arg1: memref<1x8x32xf32, #tpu.memory_space<vmem>>, %arg2: memref<32x48xf32, #tpu.memory_space<vmem>>, %arg3: memref<1x8x16xf32, #tpu.memory_space<vmem>>) attributes {dimension_semantics = [#tpu.dimension_semantics<parallel>], iteration_bounds = array<i64: 2>, scalar_prefetch = 0 : i64, scratch_operands = 0 : i64, tpu.core_type = #tpu.core_type<tc>, window_params = [{transform_indices = @transform_0, window_bounds = array<i64: 1, 8, 32>}, {pipeline_mode = #tpu.pipeline_mode<synchronous>, transform_indices = @transform_1, window_bounds = array<i64: 32, 48>}, {transform_indices = @transform_2, window_bounds = array<i64: 1, 8, 16>}]} {
    %c0 = arith.constant 0 : index
    %c0_0 = arith.constant 0 : index
    %c0_1 = arith.constant 0 : index
    %0 = vector.load %arg1[%c0, %c0_0, %c0_1] : memref<1x8x32xf32, #tpu.memory_space<vmem>>, vector<1x8x32xf32>
    %c0_2 = arith.constant 0 : index
    %c0_3 = arith.constant 0 : index
    %1 = vector.load %arg2[%c0_2, %c0_3] : memref<32x48xf32, #tpu.memory_space<vmem>>, vector<32x48xf32>
    %2 = vector.shape_cast %0 : vector<1x8x32xf32> to vector<8x32xf32>
    %cst = arith.constant dense<0.000000e+00> : vector<8x48xf32>
    %3 = tpu.matmul %2, %1, %cst {dimension_numbers = #tpu.dot_dimension_numbers<[1], [0], [0], [1], [0, 0, 1, 1], [], []>} : vector<8x32xf32>, vector<32x48xf32>, vector<8x48xf32> -> vector<8x48xf32>
    %4 = vector.shape_cast %3 : vector<8x48xf32> to vector<1x8x48xf32>
    %5 = vector.extract_strided_slice %4 {offsets = [0, 0, 0], sizes = [1, 8, 16], strides = [1, 1, 1]} : vector<1x8x48xf32> to vector<1x8x16xf32>
    %6 = vector.extract_strided_slice %4 {offsets = [0, 0, 16], sizes = [1, 8, 16], strides = [1, 1, 1]} : vector<1x8x48xf32> to vector<1x8x16xf32>
    %cst_4 = arith.constant 2.500000e-01 : f32
    %7 = vector.broadcast %cst_4 : f32 to vector<1x8x16xf32>
    %8 = arith.mulf %6, %7 : vector<1x8x16xf32>
    %9 = vector.extract_strided_slice %4 {offsets = [0, 0, 32], sizes = [1, 8, 16], strides = [1, 1, 1]} : vector<1x8x48xf32> to vector<1x8x16xf32>
    "tpu.trace_start"() <{level = 10 : i32, message = "bqd,bkd->bqk"}> : () -> ()
    %cst_5 = arith.constant dense<0.000000e+00> : vector<1x8x8xf32>
    %10 = tpu.matmul %8, %5, %cst_5 {dimension_numbers = #tpu.dot_dimension_numbers<[2], [2], [1], [1], [0, 0, 0, 1, 1, 1], [0], [0]>} : vector<1x8x16xf32>, vector<1x8x16xf32>, vector<1x8x8xf32> -> vector<1x8x8xf32>
    "tpu.trace_stop"() : () -> ()
    %11 = tpu.iota {dimensions = array<i32: 1>} : vector<1x8x8xi32>
    %12 = tpu.iota {dimensions = array<i32: 2>} : vector<1x8x8xi32>
    %13 = arith.cmpi sle, %12, %11 : vector<1x8x8xi32>
    %cst_6 = arith.constant 0xFF800000 : f32
    %14 = vector.broadcast %cst_6 : f32 to vector<1x8x8xf32>
    %15 = arith.select %13, %10, %14 : vector<1x8x8xi1>, vector<1x8x8xf32>
    %cst_7 = arith.constant dense<0xFF800000> : vector<1x8xf32>
    %16 = vector.multi_reduction <maximumf>, %15, %cst_7 [2] : vector<1x8x8xf32> to vector<1x8xf32>
    %17 = vector.shape_cast %16 : vector<1x8xf32> to vector<1x8x1xf32>
    %18 = vector.broadcast %17 : vector<1x8x1xf32> to vector<1x8x8xf32>
    %19 = arith.subf %15, %18 : vector<1x8x8xf32>
    %20 = math.exp %19 : vector<1x8x8xf32>
    %cst_8 = arith.constant dense<0.000000e+00> : vector<1x8xf32>
    %21 = vector.multi_reduction <add>, %20, %cst_8 [2] : vector<1x8x8xf32> to vector<1x8xf32>
    %22 = vector.shape_cast %21 : vector<1x8xf32> to vector<1x8x1xf32>
    %23 = tpu.reciprocal %22 {approx = true} : vector<1x8x1xf32> -> vector<1x8x1xf32>
    %24 = arith.mulf %22, %23 : vector<1x8x1xf32>
    %cst_9 = arith.constant 2.000000e+00 : f32
    %25 = vector.broadcast %cst_9 : f32 to vector<1x8x1xf32>
    %26 = arith.subf %25, %24 : vector<1x8x1xf32>
    %27 = arith.mulf %23, %26 : vector<1x8x1xf32>
    %28 = vector.broadcast %27 : vector<1x8x1xf32> to vector<1x8x8xf32>
    %29 = arith.mulf %20, %28 : vector<1x8x8xf32>
    "tpu.trace_start"() <{level = 10 : i32, message = "bqk,bkd->bqd"}> : () -> ()
    %cst_10 = arith.constant dense<0.000000e+00> : vector<1x8x16xf32>
    %30 = tpu.matmul %29, %9, %cst_10 {dimension_numbers = #tpu.dot_dimension_numbers<[2], [1], [1], [2], [0, 0, 0, 1, 1, 2], [0], [0]>} : vector<1x8x8xf32>, vector<1x8x16xf32>, vector<1x8x16xf32> -> vector<1x8x16xf32>
    "tpu.trace_stop"() : () -> ()
    %c0_11 = arith.constant 0 : index
    %c0_12 = arith.constant 0 : index
    %c0_13 = arith.constant 0 : index
    %31 = vector.load %arg3[%c0_11, %c0_12, %c0_13] : memref<1x8x16xf32, #tpu.memory_space<vmem>>, vector<1x8x16xf32>
    tpu.vector_store %arg3[%c0_11, %c0_12, %c0_13], %30 {strides = array<i32>} : memref<1x8x16xf32, #tpu.memory_space<vmem>>, vector<1x8x16xf32>,
    return
  }
  func.func @transform_0(%arg0: i32) -> (i32, i32, i32) {
    %c0_i32 = arith.constant 0 : i32
    %c0_i32_0 = arith.constant 0 : i32
    %c0_i32_1 = arith.constant 0 : i32
    return %arg0, %c0_i32, %c0_i32_0 : i32, i32, i32
  }
  func.func @transform_1(%arg0: i32) -> (i32, i32) {
    %c0_i32 = arith.constant 0 : i32
    %c0_i32_0 = arith.constant 0 : i32
    %c0_i32_1 = arith.constant 0 : i32
    return %c0_i32, %c0_i32_0 : i32, i32
  }
  func.func @transform_2(%arg0: i32) -> (i32, i32, i32) {
    %c0_i32 = arith.constant 0 : i32
    %c0_i32_0 = arith.constant 0 : i32
    %c0_i32_1 = arith.constant 0 : i32
    return %arg0, %c0_i32, %c0_i32_0 : i32, i32, i32
  }
}

</mosaic_0001>

<bundles_post_ra>
// kernel: tpu_custom_call.1
= control target key start
LH: loop header
LB: loop body
LE: loop exit
PB: predicated region body
PF: predicated region fallthrough
CT: control target
= control target key end

     0   :  { %7 = vsyncpa [#allocation3], 0  ;;  %s1011_s0 = inlined_call_operand.hbm [shape: f32[2,8,32], index: 0, kind: input, shape index: {}]   ;;  %s1012_s1 = inlined_call_operand.hbm [shape: f32[32,48], index: 1, kind: input, shape index: {}]   ;;  %s1013_s2 = inlined_call_operand.hbm [shape: f32[2,8,16], index: 2, kind: output, shape index: {}]  }
   0x1   :  { %9 = vsyncpa [#allocation3 + $0x1], 0 }
   0x2   :  { %10 = vsyncpa [#allocation6], 0 }
   0x3   :  { %11 = vsyncpa [#allocation4], 0 }
   0x4   :  { %13 = vsyncpa [#allocation4 + $0x1], 0  ;;  %s802_s9 = smov 0   ;;  %s804_s10 = smov 0  }
   0x5   :  { %s806_s11 = smov 0   ;;  %s808_s12 = smov 0  }
   0x6 LB: > { %s823_s13 = sadd.s32 4294967295, %s775_s12   ;;  %s525_s14 = sadd.s32 4294967294, %s775_s12   ;;  %s775_s12 = sphi %s808_s12, %s1033_s12   ;;  %s771_s11 = sphi %s806_s11, %s1032_s11   ;;  %s767_s10 = sphi %s804_s10, %s1031_s10   ;;  %s763_s9 = sphi %s802_s9, %s1030_s9  }
   0x7   : > { %p39_p0 = scmp.ne.s32.totalorder %s767_s10, %s763_s9  ;;  %p1014_p1 = scmp.eq.s32.totalorder %s823_s13, 0 }
   0x8   : > { %p90_p3 = scmp.eq.s32.totalorder %s525_s14, 1  ;;  %p526_p5 = scmp.ge.s32.totalorder %s775_s12, 1 }
   0x9   : > { %p832_p4 = por %p1014_p1, %p39_p0  ;;  %p97_p7 = scmp.lt.s32.totalorder %s775_s12, 3 }
   0xa   : > { %p837_p6 = por %p90_p3, %p39_p0  ;;  %s777_s18 = smov [#allocation5]  }
   0xb   : > { %s1017_s15 = scalar_select %p832_p4, 1, 0 }
   0xc   : > { %s1018_s16 = scalar_select %p837_p6, 1, 0 }
   0xd   : > { %p842_p8 = pnand %p526_p5, %p97_p7  ;;  %s109_s19 = sshll.u32 %s777_s18, 4  ;;  %s846_s19 = int_to_ptr.vmem [resolvable:$true] %s109_s19 }
   0xe   : > { %s858_s21 = sadd.s32 1, %s775_s12   ;;  %s26_s22 = sadd.s32 1, %s771_s11 }
   0xf   : > { %s1019_s17 = scalar_select %p842_p8, 1, 0 }
  0x10   : > { %p587_p9 = pneg %p842_p8  ;;  %s23_s23 = ssub.s32 %s775_s12, %s858_s21 }
  0x11   : > { %s647_s26 = scalar_lea.hbm %s1012_s1, 512 }
  0x12   : > { %p853_p11 = pnand %p587_p9, %p1014_p1  ;;  %p648_p12 = scmp.ne.s32.totalorder %s1012_s1, %s647_s26 }
  0x13   : > { %p654_p5 = scmp.lt.u32.totalorder %s647_s26, %s1012_s1 }
  0x14   : > { %p649_p13 = pneg %p853_p11 }
  0x16   : > { %p650_p0 = pnand %p649_p13, %p648_p12 }
  0x18   : > { %p651_p3 = pneg %p650_p0 }
  0x1a   : > { %p656_p7 = pnand %p654_p5, %p651_p3 }
  0x1c   : > { %659 = shalt.err (!%p656_p7)
}
  0x1d   : > { %s660_s3 = scalar_lea.vmem %s846_s19, 512  ;;  %p668_p2 = scmp.lt.s32.totalorder %s846_s19, %s846_s19 }
  0x1e   : > { %p661_p9 = scmp.ne.s32.totalorder %s846_s19, %s660_s3  ;;  %p669_p6 = scmp.lt.s32.totalorder %s660_s3, %s660_s3 }
  0x20   : > { %p663_p10 = pnand %p661_p9, %p649_p13  ;;  %p670_p4 = por %p669_p6, %p668_p2 }
  0x22   : > { %p664_p1 = pneg %p663_p10 }
  0x24   : > { %p671_p8 = pnand %p670_p4, %p664_p1 }
  0x26   : > { %674 = shalt.err (!%p671_p8)
}
  0x27   : > { %s778_s4 = smov 128   ;;  %s779_s5 = smov 8  }
  0x28   : > { %590 = dma.hbm_to_vmem [thread:$0]  (!%p853_p11), %s1012_s1, 512, %s846_s19, [#allocation6], %s778_s4, %s778_s4, %s779_s5  }
  0x29   : > { %p24_p2 = scmp.eq.s32.totalorder %s23_s23, 0  ;;  %p33_p1 = scmp.ne.s32.totalorder %s771_s11, %s767_s10 }
  0x2a   : > { %p34_p4 = scmp.eq.s32.totalorder %s775_s12, 0  ;;  %p600_p6 = scmp.lt.s32.totalorder %s775_s12, 2 }
  0x2b   : > { %s889_s8 = scalar_select %p24_p2, %s771_s11, %s26_s22  }
  0x2c   : > { %p35_p8 = por %p34_p4, %p33_p1  ;;  %p1021_p10 = scmp.eq.s32.totalorder %s823_s13, 1 }
  0x2d   : > { %s123_s18 = sand.u32 1, %s771_s11   ;;  %s530_s24 = sshll.u32 %s775_s12, 7 }
  0x2e   : > { %p893_p12 = por %p1021_p10, %p33_p1  ;;  %s529_s25 = sshll.u32 %s123_s18, 3 }
  0x2f   : > { %s902_s27 = scalar_lea.hbm %s1011_s0, %s530_s24  ;;  %s127_s19 = scalar_lea.vmem [#allocation2], %s529_s25 }
  0x30   : > { %s134_s22 = sshll.u32 %s127_s19, 4  ;;  %p904_p11 = pnand %p600_p6, %p35_p8  ;;  %s908_s22 = int_to_ptr.vmem [resolvable:$true] %s134_s22 }
  0x31   : > { %s124_s28 = scalar_lea.sflag [#allocation3], %s123_s18  ;;  %s675_s29 = scalar_lea.hbm %s902_s27, 128 }
  0x32   : > { %p676_p13 = scmp.ne.s32.totalorder %s902_s27, %s675_s29  ;;  %p677_p0 = pneg %p904_p11 }
  0x33   : > { %s680_s4 = scalar_lea.hbm %s1011_s0, 256  ;;  %p681_p7 = scmp.lt.u32.totalorder %s902_s27, %s1011_s0 }
  0x34   : > { %p678_p3 = pnand %p677_p0, %p676_p13  ;;  %p682_p9 = scmp.lt.u32.totalorder %s680_s4, %s675_s29 }
  0x35   : > { %p684_p1 = scmp.lt.u32.totalorder %s675_s29, %s902_s27 }
  0x36   : > { %p679_p5 = pneg %p678_p3  ;;  %p683_p2 = por %p682_p9, %p681_p7 }
  0x38   : > { %p685_p4 = por %p684_p1, %p683_p2 }
  0x3a   : > { %p686_p6 = pnand %p685_p4, %p679_p5 }
  0x3c   : > { %689 = shalt.err (!%p686_p6)
}
  0x3d   : > { %s690_s7 = scalar_lea.vmem %s908_s22, 128  ;;  %s780_s18 = smov [#allocation2]  }
  0x3e   : > { %p691_p8 = scmp.ne.s32.totalorder %s908_s22, %s690_s7  ;;  %s695_s24 = sshll.u32 %s780_s18, 4  ;;  %s696_s24 = int_to_ptr.vmem [resolvable:$false] %s695_s24 }
  0x3f   : > { %s697_s25 = scalar_lea.vmem %s696_s24, 256  ;;  %p698_p3 = scmp.lt.s32.totalorder %s908_s22, %s696_s24 }
  0x40   : > { %p693_p10 = pnand %p691_p8, %p677_p0  ;;  %p699_p7 = scmp.lt.s32.totalorder %s697_s25, %s690_s7 }
  0x42   : > { %p694_p13 = pneg %p693_p10  ;;  %p700_p9 = por %p699_p7, %p698_p3 }
  0x44   : > { %p701_p2 = pnand %p700_p9, %p694_p13 }
  0x46   : > { %704 = shalt.err (!%p701_p2)
}
  0x47   : > { %594 = dma.hbm_to_vmem [thread:$0]  (!%p904_p11), %s902_s27, 128, %s908_s22, %s124_s28  }
  0x48   : > { %p1024_p5 = scmp.ne.s32.totalorder %s1019_s17, 0 }
  0x49   : > { %s938_s20 = sand.u32 (!%p1024_p5), 1, %s767_s10   ;;  %p1025_p0 = scmp.ne.s32.totalorder (!%p1024_p5), %s1017_s15, 0 }
  0x4a   : > { %143 = sbr.rel (%p1024_p5) target bundleno = 1183 (0x49f), region = 28  ;;  %s532_s26 = sshll.u32 (!%p1024_p5), %s938_s20, 3 }
  0x4b   : > { %s146_s19 = scalar_lea.sflag (!%p1024_p5), [#allocation3], %s938_s20  ;;  %s149_s29 = scalar_lea.vmem (!%p1024_p5), [#allocation2], %s532_s26 }
  0x51   : > { %750 = dma.done.wait (%p1025_p0), %s146_s19, 128  }
  0x52   : > { %752 = vsyncadd (%p1025_p0), %s146_s19, 4294967168  ;;  %p1026_p11 = scmp.eq.s32.totalorder %s823_s13, 0 }
  0x54   : > { %754 = dma.done.wait (%p1026_p11), [#allocation6], 512   ;;  %p1027_p1 = pmov %p1026_p11 }
  0x55   : > { %v781_v0 = vmov 0.0|0.0   ;;  %vm782_vm0 = vmmov 0   ;;  %v783_v1 = vmov 0.0   ;;  %v175_v2 = vld [vmem:[#allocation5] sm:$0xff]  ;;  %v176_v3 = vld [vmem:[#allocation5 + $0x8] sm:$0xff]  ;;  %v177_v4 = vld [vmem:[#allocation5 + $0x10] sm:$0xff]  ;;  %v333_v13 = vlaneseq }
  0x56   : > { %756 = vsyncadd (%p1027_p1), [#allocation6], 4294966784  ;;  %573 = vmatprep.subr.bf16.mxu0 %v781_v0  ;;  %560 = vmatprep.mubr.msk.f32.mxu0 %vm782_vm0, %v783_v1  ;;  %v574_v5 = vpack.c.bf16 %v176_v3, %v175_v2  ;;  %v178_v6 = vld [vmem:[#allocation5 + $0x18] sm:$0xff]  ;;  %vm179_vm1 = vcmask 261120   ;;  %vm257_vm2 = vcmask 130048   ;;  %s784_s15 = smov 112  }
  0x57   : > { %563 = vmatprep.subr.mxu1 %v783_v1  ;;  %565 = vmatprep.mubr.msk.f32.mxu1 %vm782_vm0, %v783_v1  ;;  %v577_v7 = vpack.c.bf16 %v178_v6, %v177_v4  ;;  %v174_v8 = vld [vmem:[%s149_s29] sm:$0xff]  ;;  %v334_v14 = vshrl.u32 %v333_v13, 7  ;;  %v336_v15 = vand.u32 127, %v333_v13  ;;  %vm339_vm4 = vcmask 64512   ;;  %s785_s17 = smov 96   ;;  %s540_s27 = sshll.u32 %s823_s13, 7 }
  0x58   : > { %575 = vmatpush3.bf16.msra.mxu0 %v574_v5  ;;  %s173_s22 = scalar_lea.vmem [#allocation7], %s532_s26  ;;  %s966_s3 = scalar_lea.hbm %s1013_s2, %s540_s27 }
  0x59   : > { %576 = vmatprep.subr.bf16.mxu0 %v781_v0  ;;  %vm337_vm3 = vcmp.le.s32.totalorder %v336_v15, %v334_v14  ;;  %s445_s23 = sshll.u32 %s173_s22, 4  ;;  %s432_s4 = scalar_lea.sflag [#allocation4], %s938_s20  ;;  %s968_s23 = int_to_ptr.vmem [resolvable:$true] %s445_s23 }
  0x5a   : > { %s705_s5 = scalar_lea.vmem %s968_s23, 128  ;;  %s786_s13 = smov [#allocation7]  }
  0x5b   : > { %p706_p4 = scmp.ne.s32.totalorder %s968_s23, %s705_s5  ;;  %s709_s6 = sshll.u32 %s786_s13, 4  ;;  %s710_s6 = int_to_ptr.vmem [resolvable:$false] %s709_s6 }
  0x5c   : > { %578 = vmatpush3.bf16.msra.mxu0 %v577_v7  ;;  %s711_s7 = scalar_lea.vmem %s710_s6, 256  ;;  %p712_p10 = scmp.lt.s32.totalorder %s968_s23, %s710_s6 }
  0x5d   : > { %p707_p6 = pnand %p706_p4, %p893_p12  ;;  %p713_p13 = scmp.lt.s32.totalorder %s711_s7, %s705_s5 }
  0x5f   : > { %561 = vmatmul.mubr.msk.f32.vlgmr.msra.gmra.mrb[0].mxu0 %vm179_vm1, %v174_v8  ;;  %p708_p8 = pneg %p707_p6  ;;  %p714_p3 = por %p713_p13, %p712_p10 }
  0x61   : > { %p715_p7 = pnand %p714_p3, %p708_p8 }
 0x132   : > { %v249_v9 = vpop.f32.mrb[0].mxu0 }
 0x133   : > { %v562_v10 = vpop.f32.mrb[1].mxu0  ;;  %564 = vmatpush3.xpose.msk.msra.mxu1 %vm257_vm2, %v249_v9  ;;  %v253_v11 = vmul.f32 0.25, %v249_v9 }
 0x134   : > { %568 = vmatprep.subr.mxu1 %v783_v1 }
 0x135   : > { %255 = vrot.lane.b32.xlu0 %v253_v11, %s784_s15 }
 0x1a7   : > { %v256_v12 = vpop.permute.xlu0 %255 }
 0x1a8   : > { %566 = vmatmul.mubr.msk.f32.vlgmr.msra.gmra.mrb[0].mxu1 %vm257_vm2, %v256_v12 }
 0x1a9   : > { %570 = vmatprep.mubr.msk.f32.mxu1 %vm782_vm0, %v783_v1 }
 0x27b   : > { %v329_v16 = vpop.f32.mrb[0].mxu1 }
 0x27c   : > { %v338_v17 = vsel %vm337_vm3, %v329_v16, -inf  ;;  %v567_v18 = vpop.f32.mrb[1].mxu1 }
 0x27d   : > { %v340_v19 = vsel %vm339_vm4, %v338_v17, -inf }
 0x27e   : > { %341 = vmax.xlane.f32.xlu0 %v340_v19 }
 0x30b   : > { %v342_v20 = vpop.xlane.xlu0 %341 }
 0x30c   : > { %v343_v21 = vsub.f32 %v338_v17, %v342_v20 }
 0x30e   : > { %v344_v22 = vmul.f32 1.442695, %v343_v21 }
 0x310   : > { %643 = vpow2.f32 %v344_v22 }
 0x31a   : > { %v644_v23 = vpop.eup %643 }
 0x31b   : > { %v346_v24 = vsel %vm339_vm4, %v644_v23, 0.0 }
 0x31c   : > { %347 = vadd.xlane.f32.xlu1 %v346_v24 }
 0x32d   : > { %354 = vrot.lane.b32.xlu1 %v249_v9, %s785_s17 }
 0x3a9   : > { %v348_v25 = vpop.xlane.xlu1 %347 }
 0x3aa   : > { %645 = vrcp.f32 %v348_v25 }
 0x3ad   : > { %v355_v26 = vpop.permute.xlu1 %354 }
 0x3ae   : > { %569 = vmatpush3.msra.mxu1 %v355_v26 }
 0x3b4   : > { %v646_v27 = vpop.eup %645 }
 0x3b5   : > { %v350_v28 = vmul.f32 %v646_v27, %v348_v25 }
 0x3b7   : > { %v351_v29 = vsub.f32 2.0, %v350_v28 }
 0x3b9   : > { %v352_v30 = vmul.f32 %v646_v27, %v351_v29 }
 0x3bb   : > { %v353_v31 = vmul.f32 %v644_v23, %v352_v30 }
 0x3bd   : > { %571 = vmatmul.mubr.msk.f32.vlgmr.msra.gmra.mrb[2].mxu1 %vm339_vm4, %v353_v31 }
 0x490   : > { %v426_v32 = vpop.f32.mrb[2].mxu1 }
 0x491   : > { %430 = vst.msk [vmem:[%s173_s22] sm:$0xff] %vm257_vm2, %v426_v32  ;;  %v572_v33 = vpop.f32.mrb[3].mxu1 }
 0x492   : > { %718 = shalt.err (!%p715_p7)
}
 0x493   : > { %s719_s18 = scalar_lea.hbm %s966_s3, 128  ;;  %s723_s20 = scalar_lea.hbm %s1013_s2, 256 }
 0x494   : > { %p720_p9 = scmp.ne.s32.totalorder %s966_s3, %s719_s18  ;;  %p724_p0 = scmp.lt.u32.totalorder %s966_s3, %s1013_s2 }
 0x495   : > { %p725_p11 = scmp.lt.u32.totalorder %s723_s20, %s719_s18  ;;  %p727_p4 = scmp.lt.u32.totalorder %s719_s18, %s966_s3 }
 0x496   : > { %p721_p2 = pnand %p720_p9, %p893_p12 }
 0x497   : > { %p726_p1 = por %p725_p11, %p724_p0 }
 0x498   : > { %p722_p5 = pneg %p721_p2 }
 0x499   : > { %p728_p6 = por %p727_p4, %p726_p1 }
 0x49b   : > { %p729_p8 = pnand %p728_p6, %p722_p5 }
 0x49d   : > { %732 = shalt.err (!%p729_p8)
}
 0x49e   : > { %585 = dma.vmem_to_hbm [thread:$0]  (%p893_p12), %s968_s23, 128, %s966_s3, %s432_s4  }
 0x49f PF: > { %s457_s29 = sand.u32 1, %s763_s9   ;;  %p1028_p10 = scmp.ne.s32.totalorder %s1018_s16, 0 }
 0x4a0   : > { %p1029_p13 = scmp.ge.s32.totalorder %s775_s12, 2  ;;  %s458_s15 = scalar_lea.sflag [#allocation4], %s457_s29 }
 0x4a2   : > { %p596_p3 = pnand %p1029_p13, %p1028_p10 }
 0x4a4   : > { %758 = dma.done.wait (!%p596_p3), %s458_s15, 128  }
 0x4a5   : > { %760 = vsyncadd (!%p596_p3), %s458_s15, 4294967168  ;;  %p16_p7 = scmp.ge.s32.totalorder %s858_s21, 4   ;;  %s1030_s9 = smov %s767_s10 }
 0x4a6   : > { %s1031_s10 = smov %s771_s11  ;;  %s1032_s11 = smov %s889_s8 }
 0x4a7   : > { %s1033_s12 = smov %s858_s21  ;;  %18 = sbr.rel (!%p16_p7) target bundleno = 6 (0x6), region = 77 }
 0x4ae   :  { %463 = vsyncpa [#allocation3], 1 }
 0x4af   :  { %465 = vsyncpa [#allocation3 + $0x1], 1 }
 0x4b0   :  { %466 = vsyncpa [#allocation6], 1 }
 0x4b1   :  { %467 = vsyncpa [#allocation4], 1 }
 0x4b2   :  { %469 = vsyncpa [#allocation4 + $0x1], 1 }

</bundles_post_ra>
